<compile_context>
chip_gen: v5e
topology: v5e:2x2
jax: 0.10.0
libtpu: 0.0.40
codegen_flags: <defaults>
</compile_context>

<pallas_src>
import numpy as np
import jax
import jax.numpy as jnp
from jax import lax
from jax.experimental import pallas as pl
from jax.experimental.pallas import tpu as pltpu


# --------------------------------------------------------------------------
# Cell ("base") anchors - deterministic parameter setup (module __init__ glue)
# --------------------------------------------------------------------------
def _generate_cell_anchors(scales, aspect_ratios):
    scales = np.asarray(scales, np.float32)
    ar = np.asarray(aspect_ratios, np.float32)
    h_ratios = np.sqrt(ar)
    w_ratios = 1.0 / h_ratios
    ws = (w_ratios[:, None] * scales[None, :]).reshape(-1)
    hs = (h_ratios[:, None] * scales[None, :]).reshape(-1)
    base = np.stack([-ws, -hs, ws, hs], axis=1) / 2.0
    return np.round(base).astype(np.float32)  # round-half-to-even, like torch.round


def _level_constants(gw, stride_w, stride_h, base_anchors):
    """Host-side (numpy) per-level lane patterns, shape (1, L) with L = gw*A*4.

    xpart[l] = base[l % (A*4)] + (l // (A*4)) * stride_w   on x columns
             = base[l % (A*4)]                             on y columns
    ystep[l] = stride_h on y columns ([*,y1,*,y2]), 0.0 on x columns
               (stride_h folded in on the host -> one fewer VPU mul in-kernel).
    """
    A = base_anchors.shape[0]
    a4 = A * 4
    L = gw * a4
    lane = np.arange(L)
    x_cell = lane // a4
    col = lane % 4                           # position inside [x1, y1, x2, y2]
    is_y = (col % 2).astype(np.float32)      # 1.0 on y columns
    base_tiled = np.tile(base_anchors.reshape(-1), gw)
    xpart = base_tiled + (1.0 - is_y) * (x_cell * float(stride_w))
    ystep = is_y * float(stride_h)
    return (xpart.astype(np.float32).reshape(1, L),
            ystep.astype(np.float32).reshape(1, L))


# --------------------------------------------------------------------------
# Per-generation block sizing
# --------------------------------------------------------------------------
def _select_block_cap():
    """Per-block VMEM cap (bytes) and whether to prefer an even step count."""
    kind = ""
    try:
        kind = jax.devices()[0].device_kind.lower()
    except Exception:
        pass
    if "v5" in kind:                       # v5e: 16 MiB scoped VMEM default
        return 4 * 1024 * 1024, False
    if "v6" in kind or "trillium" in kind:  # v6e: single TC, 32 MiB scoped
        return 12 * 1024 * 1024, False      #  -> one step per level when it fits
    if "v7" in kind or "7x" in kind:        # v7x: two TCs share the grid
        return 12 * 1024 * 1024, True       #  -> even #steps for TC balance
    return 4 * 1024 * 1024, False           # unknown: conservative


def _pick_row_block(gh, L, cap_bytes, prefer_even_steps):
    """Rows per grid step: whole level if it fits the cap, else a multiple of 8."""
    level_bytes = gh * L * 4
    if gh <= 8 or level_bytes <= cap_bytes:
        return gh                                   # single full-extent block
    steps = -(-level_bytes // cap_bytes)            # cdiv
    if prefer_even_steps and steps % 2:
        steps += 1                                  # balance v7x's two TensorCores
    steps = min(steps, max(1, gh // 8))             # keep T >= 8
    T = -(-gh // steps)
    T = ((T + 7) // 8) * 8                          # sublane multiple
    return min(T, gh)


_MIN_PALLAS_BYTES = 32 * 1024   # below this, let XLA fuse the level (no launch)
_MIN_LANE_WIDTH = 128           # below this, stores would be mostly masked


def _use_pallas_for_level(gh, L):
    return (L >= _MIN_LANE_WIDTH) and (gh * L * 4 >= _MIN_PALLAS_BYTES)


# --------------------------------------------------------------------------
# Pallas kernel: per-row y shift (row iota) added onto the lane-dense pattern
# --------------------------------------------------------------------------
def _anchor_rows_kernel(xpart_ref, ystep_ref, out_ref):
    # xpart_ref : VMEM (1, L) f32 -- base anchors (+ x_cell*stride_w on x cols)
    # ystep_ref : VMEM (1, L) f32 -- stride_h on y columns, 0.0 on x columns
    # out_ref   : VMEM (T, L) f32 -- T feature-map rows, lane-dense
    T, L = out_ref.shape
    row0 = pl.program_id(0) * T
    yi = (row0 + lax.broadcasted_iota(jnp.int32, (T, L), 0)).astype(jnp.float32)
    out_ref[...] = xpart_ref[...] + yi * ystep_ref[...]


def grid_anchors_pallas(grid_size, stride, base_anchors, *,
                        block_cap_bytes, prefer_even_steps):
    """Anchors for one feature level -> (grid_h*grid_w*A, 4) float32 (Pallas)."""
    gh, gw = int(grid_size[0]), int(grid_size[1])
    sh, sw = int(stride[0]), int(stride[1])
    A = int(base_anchors.shape[0])
    L = gw * A * 4

    xpart_np, ystep_np = _level_constants(gw, sw, sh, base_anchors)
    xpart = jnp.asarray(xpart_np)
    ystep = jnp.asarray(ystep_np)

    T = _pick_row_block(gh, L, block_cap_bytes, prefer_even_steps)
    grid = (pl.cdiv(gh, T),)   # ragged last block (if any) is masked by Pallas

    cost = pl.CostEstimate(flops=3 * gh * L, transcendentals=0,
                           bytes_accessed=gh * L * 4 + 2 * L * 4)

    out = pl.pallas_call(
        _anchor_rows_kernel,
        out_shape=jax.ShapeDtypeStruct((gh, L), jnp.float32),
        grid=grid,
        in_specs=[pl.BlockSpec((1, L), lambda r: (0, 0)),
                  pl.BlockSpec((1, L), lambda r: (0, 0))],
        out_specs=pl.BlockSpec((T, L), lambda r: (r, 0)),
        compiler_params=pltpu.CompilerParams(dimension_semantics=("parallel",)),
        cost_estimate=cost,
    )(xpart, ystep)

    # Memory order of (gh, gw*A*4) is exactly (gh*gw*A, 4) row-major: free reshape.
    return out.reshape(gh * gw * A, 4)


# --------------------------------------------------------------------------
# Pure-JAX path (mirrors the PyTorch grid_anchors) - also used for micro levels
# --------------------------------------------------------------------------
def _grid_anchors_ref(grid_size, stride, base_anchors):
    gh, gw = int(grid_size[0]), int(grid_size[1])
    sh, sw = int(stride[0]), int(stride[1])
    shifts_x = jnp.arange(0, gw, dtype=jnp.float32) * sw
    shifts_y = jnp.arange(0, gh, dtype=jnp.float32) * sh
    shift_y, shift_x = jnp.meshgrid(shifts_y, shifts_x, indexing="ij")
    shift_x = shift_x.reshape(-1)
    shift_y = shift_y.reshape(-1)
    shifts = jnp.stack((shift_x, shift_y, shift_x, shift_y), axis=1)
    base = jnp.asarray(base_anchors, jnp.float32)
    return (shifts[:, None, :] + base[None, :, :]).reshape(-1, 4)


# --------------------------------------------------------------------------
# Module wrapper reproducing AnchorGenerator.forward semantics
# --------------------------------------------------------------------------
class AnchorGeneratorPallas:
    def __init__(self, sizes=((128, 256, 512),), aspect_ratios=(0.5, 1.0, 2.0)):
        if not isinstance(sizes[0], (list, tuple)):
            sizes = tuple((s,) for s in sizes)
        if not isinstance(aspect_ratios[0], (list, tuple)):
            aspect_ratios = (aspect_ratios,) * len(sizes)
        assert len(sizes) == len(aspect_ratios)
        self.sizes = sizes
        self.aspect_ratios = aspect_ratios
        self.cell_anchors = [
            _generate_cell_anchors(s, a) for s, a in zip(sizes, aspect_ratios)
        ]
        self._block_cap_bytes, self._prefer_even_steps = _select_block_cap()

    def num_anchors_per_location(self):
        return [len(s) * len(a) for s, a in zip(self.sizes, self.aspect_ratios)]

    def __call__(self, image_tensors, image_sizes, feature_maps):
        # image_tensors: (B, C, H, W) NCHW; feature_maps: list of (B, C', h, w) NCHW.
        if len(feature_maps) != len(self.cell_anchors):
            raise ValueError("number of feature maps must match number of anchor sizes")
        grid_sizes = [fm.shape[-2:] for fm in feature_maps]
        image_size = image_tensors.shape[-2:]
        strides = [
            (image_size[0] // g[0], image_size[1] // g[1]) for g in grid_sizes
        ]
        # NOTE: the reference builds the shift grid in float32; float32 + cell-anchor
        # dtype promotes back to float32, so returned anchors are float32 regardless
        # of the feature-map dtype.  We emit float32 directly.
        per_level = []
        for g, s, ca in zip(grid_sizes, strides, self.cell_anchors):
            gh, gw = int(g[0]), int(g[1])
            L = gw * int(ca.shape[0]) * 4
            if _use_pallas_for_level(gh, L):
                per_level.append(grid_anchors_pallas(
                    (gh, gw), s, ca,
                    block_cap_bytes=self._block_cap_bytes,
                    prefer_even_steps=self._prefer_even_steps))
            else:
                # micro / lane-sparse level: plain jnp, fused by XLA (no launch)
                per_level.append(_grid_anchors_ref((gh, gw), s, ca))
        # Concatenate ONCE (hoisted out of the per-image loop); anchors are
        # identical per image and JAX arrays are immutable, so images share it.
        if len(per_level) == 1:
            all_anchors = per_level[0]
        else:
            all_anchors = jnp.concatenate(per_level, axis=0)
        return [all_anchors for _ in image_sizes]


# --------------------------------------------------------------------------
# Smoke test + validation
# --------------------------------------------------------------------------
if __name__ == "__main__":
    key = jax.random.PRNGKey(0)
    k1, k2, k3, k4 = jax.random.split(key, 4)

    # Deterministic example: batch=2, image 256x256, FPN-style pyramid:
    #   64x64 (stride 4, A=6)  -> Pallas level, single grid step
    #   32x32 (stride 8, A=9)  -> Pallas level, single grid step
    #    8x8  (stride 32, A=6) -> micro level, jnp path (fused by XLA)
    image_tensors = jax.random.normal(k1, (2, 3, 256, 256), jnp.float32)  # NCHW
    image_sizes = [(256, 256), (256, 256)]
    feature_maps = [
        jax.random.normal(k2, (2, 4, 64, 64), jnp.float32),               # NCHW
        jax.random.normal(k3, (2, 4, 32, 32), jnp.float32),
        jax.random.normal(k4, (2, 4, 8, 8), jnp.float32),
    ]

    gen = AnchorGeneratorPallas(
        sizes=((32, 64), (64, 128, 256), (256, 512)),
        aspect_ratios=((0.5, 1.0, 2.0), (0.5, 1.0, 2.0), (0.5, 1.0, 2.0)),
    )
    anchors = gen(image_tensors, image_sizes, feature_maps)
    anchors = [jax.block_until_ready(a) for a in anchors]

    # Validate against a pure-JAX transcription of the PyTorch math.
    ref = jnp.concatenate([
        _grid_anchors_ref((64, 64), (4, 4), gen.cell_anchors[0]),
        _grid_anchors_ref((32, 32), (8, 8), gen.cell_anchors[1]),
        _grid_anchors_ref((8, 8), (32, 32), gen.cell_anchors[2]),
    ], axis=0)
    n_expected = 64 * 64 * 6 + 32 * 32 * 9 + 8 * 8 * 6
    assert len(anchors) == len(image_sizes)
    for a in anchors:
        assert a.shape == (n_expected, 4) and a.dtype == jnp.float32
        assert jnp.allclose(a, ref), "mismatch vs reference"

    # Extra coverage: multi-step grid with a ragged last row-block and a lane
    # width that is not a multiple of 128 (gh=44, L=20*9*4=720, 64 KiB cap).
    ragged = grid_anchors_pallas((44, 20), (8, 8), gen.cell_anchors[1],
                                 block_cap_bytes=64 * 1024,
                                 prefer_even_steps=False)
    ragged = jax.block_until_ready(ragged)
    ragged_ref = _grid_anchors_ref((44, 20), (8, 8), gen.cell_anchors[1])
    assert ragged.shape == (44 * 20 * 9, 4)
    assert jnp.allclose(ragged, ragged_ref), "ragged-block mismatch vs reference"

    print("KERNEL_OK")
</pallas_src>

<mosaic_0001>
module attributes {stable_mosaic.version = 11 : i64} {
  func.func @_anchor_rows_kernel(%arg0: i32, %arg1: memref<1x1536xf32, #tpu.memory_space<vmem>>, %arg2: memref<1x1536xf32, #tpu.memory_space<vmem>>, %arg3: memref<64x1536xf32, #tpu.memory_space<vmem>>) attributes {dimension_semantics = [#tpu.dimension_semantics<parallel>], iteration_bounds = array<i64: 1>, scalar_prefetch = 0 : i64, scratch_operands = 0 : i64, tpu.core_type = #tpu.core_type<tc>, window_params = [{pipeline_mode = #tpu.pipeline_mode<synchronous>, transform_indices = @transform_0, window_bounds = array<i64: 1, 1536>}, {pipeline_mode = #tpu.pipeline_mode<synchronous>, transform_indices = @transform_1, window_bounds = array<i64: 1, 1536>}, {transform_indices = @transform_2, window_bounds = array<i64: 64, 1536>}]} {
    %c64_i32 = arith.constant 64 : i32
    %0 = arith.muli %arg0, %c64_i32 : i32
    %1 = tpu.iota {dimensions = array<i32: 0>} : vector<64x1536xi32>
    %2 = vector.broadcast %0 : i32 to vector<64x1536xi32>
    %3 = arith.addi %2, %1 : vector<64x1536xi32>
    %4 = arith.sitofp %3 : vector<64x1536xi32> to vector<64x1536xf32>
    %c0 = arith.constant 0 : index
    %c0_0 = arith.constant 0 : index
    %5 = vector.load %arg1[%c0, %c0_0] : memref<1x1536xf32, #tpu.memory_space<vmem>>, vector<1x1536xf32>
    %c0_1 = arith.constant 0 : index
    %c0_2 = arith.constant 0 : index
    %6 = vector.load %arg2[%c0_1, %c0_2] : memref<1x1536xf32, #tpu.memory_space<vmem>>, vector<1x1536xf32>
    %7 = vector.broadcast %6 : vector<1x1536xf32> to vector<64x1536xf32>
    %8 = arith.mulf %4, %7 : vector<64x1536xf32>
    %9 = vector.broadcast %5 : vector<1x1536xf32> to vector<64x1536xf32>
    %10 = arith.addf %9, %8 : vector<64x1536xf32>
    %c0_3 = arith.constant 0 : index
    %c0_4 = arith.constant 0 : index
    %11 = vector.load %arg3[%c0_3, %c0_4] : memref<64x1536xf32, #tpu.memory_space<vmem>>, vector<64x1536xf32>
    tpu.vector_store %arg3[%c0_3, %c0_4], %10 {strides = array<i32>} : memref<64x1536xf32, #tpu.memory_space<vmem>>, vector<64x1536xf32>,
    return
  }
  func.func @transform_0(%arg0: i32) -> (i32, i32) {
    %c0_i32 = arith.constant 0 : i32
    %c0_i32_0 = arith.constant 0 : i32
    %c0_i32_1 = arith.constant 0 : i32
    return %c0_i32, %c0_i32_0 : i32, i32
  }
  func.func @transform_1(%arg0: i32) -> (i32, i32) {
    %c0_i32 = arith.constant 0 : i32
    %c0_i32_0 = arith.constant 0 : i32
    %c0_i32_1 = arith.constant 0 : i32
    return %c0_i32, %c0_i32_0 : i32, i32
  }
  func.func @transform_2(%arg0: i32) -> (i32, i32) {
    %c0_i32 = arith.constant 0 : i32
    %c0_i32_0 = arith.constant 0 : i32
    return %arg0, %c0_i32 : i32, i32
  }
}

</mosaic_0001>

<bundles_post_ra>
// kernel: tpu_custom_call.1
= control target key start
LH: loop header
LB: loop body
LE: loop exit
PB: predicated region body
PF: predicated region fallthrough
CT: control target
= control target key end

     0   :  { %7 = vsyncpa [#allocation3], 0  ;;  %s889_s0 = inlined_call_operand.hbm [shape: f32[1,1536], index: 0, kind: input, shape index: {}]   ;;  %s890_s1 = inlined_call_operand.hbm [shape: f32[1,1536], index: 1, kind: input, shape index: {}]   ;;  %s891_s2 = inlined_call_operand.hbm [shape: f32[64,1536], index: 2, kind: output, shape index: {}]  }
   0x1   :  { %8 = vsyncpa [#allocation6], 0 }
   0x2   :  { %9 = vsyncpa [#allocation4], 0  ;;  %s15_s11 = sshll.u32 %s889_s0, 4  ;;  %s514_s12 = smov [#allocation2]   ;;  %s16_s11 = int_to_ptr.hbm [resolvable:$true] %s15_s11 }
   0x3   :  { %s17_s13 = sshll.u32 %s514_s12, 4  ;;  %s26_s16 = sshll.u32 %s890_s1, 4  ;;  %s18_s13 = int_to_ptr.vmem [resolvable:$true] %s17_s13  ;;  %s27_s16 = int_to_ptr.hbm [resolvable:$true] %s26_s16 }
   0x4   :  { %20 = dma.hbm_to_vmem [thread:$0]  %s16_s11, 192, %s18_s13, [#allocation3]  }
   0x5   :  { %s515_s17 = smov [#allocation5]  }
   0x6   :  { %s28_s18 = sshll.u32 %s515_s17, 4  ;;  %s29_s18 = int_to_ptr.vmem [resolvable:$true] %s28_s18 }
   0x7   :  { %31 = dma.hbm_to_vmem [thread:$0]  %s27_s16, 192, %s29_s18, [#allocation6]  }
   0x8   :  { %508 = dma.done.wait [#allocation3], 192  }
   0x9   :  { %509 = vsyncadd [#allocation3], 4294967104 }
   0xa   :  { %510 = dma.done.wait [#allocation6], 192  }
   0xb   :  { %511 = vsyncadd [#allocation6], 4294967104  ;;  %v41_v0 = vlaneseq  ;;  %v67_v4 = vld [vmem:[#allocation2] sm:$0xff]  ;;  %v69_v5 = vld [vmem:[#allocation5] sm:$0xff]  ;;  %s516_s0 = smov [#allocation7]   ;;  %s417_s21 = sshll.u32 %s891_s2, 4  ;;  %s418_s21 = int_to_ptr.hbm [resolvable:$true] %s417_s21 }
   0xc   :  { %v546_v7 = vperm.slane %v69_v5, 0  ;;  %v548_v8 = vperm.slane %v67_v4, 0  ;;  %v550_v9 = vperm.slane %v69_v5, 1  ;;  %v552_v10 = vperm.slane %v67_v4, 1  ;;  %v68_v27 = vld [vmem:[#allocation2 + $0x8] sm:$0xf] }
   0xd   :  { %v540_v1 = vshrl.u32 %v41_v0, 7  ;;  %v554_v11 = vperm.slane %v69_v5, 2  ;;  %v556_v12 = vperm.slane %v67_v4, 2  ;;  %v558_v13 = vperm.slane %v69_v5, 3  ;;  %v70_v28 = vld [vmem:[#allocation5 + $0x8] sm:$0xf] }
   0xe   :  { %v560_v14 = vperm.slane %v67_v4, 3  ;;  %v564_v17 = vperm.slane %v69_v5, 4  ;;  %v566_v18 = vperm.slane %v67_v4, 4  ;;  %v570_v21 = vperm.slane %v69_v5, 5  ;;  %s415_s1 = sshll.u32 %s516_s0, 4  ;;  %s517_s22 = smov 1536   ;;  %s416_s1 = int_to_ptr.vmem [resolvable:$true] %s415_s1 }
   0xf   :  { %v43_v2 = vadd.s32 8, %v540_v1  ;;  %v59_v3 = vcvt.s32.f32 %v540_v1  ;;  %v572_v22 = vperm.slane %v67_v4, 5  ;;  %v577_v26 = vperm.slane %v69_v5, 6  ;;  %s518_s23 = smov 96  }
  0x10   :  { %v582_v32 = vperm.slane %v67_v4, 6  ;;  %v586_v35 = vperm.slane %v69_v5, 7  ;;  %v588_v36 = vperm.slane %v67_v4, 7  ;;  %v591_v38 = vperm.slane %v70_v28, 0 }
  0x11   :  { %v544_v6 = vcvt.s32.f32 %v43_v2  ;;  %v97_v15 = vmul.f32 %v546_v7, %v59_v3  ;;  %v98_v16 = vmul.f32 %v550_v9, %v59_v3  ;;  %v99_v19 = vmul.f32 %v554_v11, %v59_v3 }
  0x12   :  { %v100_v20 = vmul.f32 %v558_v13, %v59_v3  ;;  %v101_v25 = vmul.f32 %v564_v17, %v59_v3  ;;  %v102_v31 = vmul.f32 %v570_v21, %v59_v3  ;;  %v103_v34 = vmul.f32 %v577_v26, %v59_v3 }
  0x13   :  { %v219_v23 = vadd.f32 %v548_v8, %v97_v15  ;;  %v220_v24 = vadd.f32 %v552_v10, %v98_v16  ;;  %v221_v29 = vadd.f32 %v556_v12, %v99_v19  ;;  %v593_v39 = vperm.slane %v68_v27, 0 }
  0x14   :  { %v222_v30 = vadd.f32 %v560_v14, %v100_v20  ;;  %v223_v33 = vadd.f32 %v566_v18, %v101_v25  ;;  %v224_v37 = vadd.f32 %v572_v22, %v102_v31  ;;  %v595_v40 = vperm.slane %v70_v28, 1 }
  0x15   :  { %315 = vst [vmem:[#allocation7] sm:$0xff] %v219_v23  ;;  %v225_v41 = vadd.f32 %v582_v32, %v103_v34  ;;  %v104_v42 = vmul.f32 %v586_v35, %v59_v3  ;;  %v599_v43 = vperm.slane %v68_v27, 1  ;;  %v601_v44 = vperm.slane %v70_v28, 2 }
  0x16   :  { %316 = vst [vmem:[#allocation7 + $0x8] sm:$0xff] %v220_v24  ;;  %v105_v45 = vmul.f32 %v591_v38, %v59_v3  ;;  %v106_v46 = vmul.f32 %v595_v40, %v59_v3  ;;  %v605_v47 = vperm.slane %v68_v27, 2  ;;  %v607_v48 = vperm.slane %v70_v28, 3 }
  0x17   :  { %317 = vst [vmem:[#allocation7 + $0x10] sm:$0xff] %v221_v29  ;;  %v226_v49 = vadd.f32 %v588_v36, %v104_v42  ;;  %v107_v50 = vmul.f32 %v601_v44, %v59_v3  ;;  %v611_v51 = vperm.slane %v68_v27, 3  ;;  %v109_v52 = vmul.f32 %v546_v7, %v544_v6 }
  0x18   :  { %318 = vst [vmem:[#allocation7 + $0x18] sm:$0xff] %v222_v30  ;;  %v227_v53 = vadd.f32 %v593_v39, %v105_v45  ;;  %v228_v54 = vadd.f32 %v599_v43, %v106_v46  ;;  %v108_v55 = vmul.f32 %v607_v48, %v59_v3  ;;  %v110_v56 = vmul.f32 %v550_v9, %v544_v6 }
  0x19   :  { %319 = vst [vmem:[#allocation7 + $0x20] sm:$0xff] %v223_v33  ;;  %v229_v57 = vadd.f32 %v605_v47, %v107_v50  ;;  %v111_v58 = vmul.f32 %v554_v11, %v544_v6  ;;  %v112_v60 = vmul.f32 %v558_v13, %v544_v6  ;;  %v231_v61 = vadd.f32 %v548_v8, %v109_v52 }
  0x1a   :  { %320 = vst [vmem:[#allocation7 + $0x28] sm:$0xff] %v224_v37  ;;  %v230_v59 = vadd.f32 %v611_v51, %v108_v55  ;;  %v113_v62 = vmul.f32 %v564_v17, %v544_v6  ;;  %v44_v63 = vadd.s32 16, %v540_v1  ;;  %v232_v0 = vadd.f32 %v552_v10, %v110_v56 }
  0x1b   :  { %321 = vst [vmem:[#allocation7 + $0x30] sm:$0xff] %v225_v41  ;;  %v114_v2 = vmul.f32 %v570_v21, %v544_v6  ;;  %v233_v3 = vadd.f32 %v556_v12, %v111_v58  ;;  %v115_v4 = vmul.f32 %v577_v26, %v544_v6  ;;  %v234_v5 = vadd.f32 %v560_v14, %v112_v60 }
  0x1c   :  { %322 = vst [vmem:[#allocation7 + $0x38] sm:$0xff] %v226_v49  ;;  %v116_v15 = vmul.f32 %v586_v35, %v544_v6  ;;  %v235_v16 = vadd.f32 %v566_v18, %v113_v62  ;;  %v117_v19 = vmul.f32 %v591_v38, %v544_v6  ;;  %v61_v20 = vcvt.s32.f32 %v44_v63 }
  0x1d   :  { %323 = vst [vmem:[#allocation7 + $0x40] sm:$0xff] %v227_v53  ;;  %v236_v23 = vadd.f32 %v572_v22, %v114_v2  ;;  %v118_v24 = vmul.f32 %v595_v40, %v544_v6  ;;  %v237_v25 = vadd.f32 %v582_v32, %v115_v4  ;;  %v119_v27 = vmul.f32 %v601_v44, %v544_v6 }
  0x1e   :  { %324 = vst [vmem:[#allocation7 + $0x48] sm:$0xff] %v228_v54  ;;  %v238_v28 = vadd.f32 %v588_v36, %v116_v15  ;;  %v120_v29 = vmul.f32 %v607_v48, %v544_v6  ;;  %v239_v30 = vadd.f32 %v593_v39, %v117_v19  ;;  %v121_v31 = vmul.f32 %v546_v7, %v61_v20 }
  0x1f   :  { %325 = vst [vmem:[#allocation7 + $0x50] sm:$0xff] %v229_v57  ;;  %v240_v33 = vadd.f32 %v599_v43, %v118_v24  ;;  %v122_v34 = vmul.f32 %v550_v9, %v61_v20  ;;  %v241_v37 = vadd.f32 %v605_v47, %v119_v27  ;;  %v123_v41 = vmul.f32 %v554_v11, %v61_v20 }
  0x20   :  { %326 = vst [vmem:[#allocation7 + $0x58] sm:$0xff] %v230_v59  ;;  %v242_v42 = vadd.f32 %v611_v51, %v120_v29  ;;  %v124_v6 = vmul.f32 %v558_v13, %v61_v20  ;;  %v243_v45 = vadd.f32 %v548_v8, %v121_v31  ;;  %v125_v46 = vmul.f32 %v564_v17, %v61_v20 }
  0x21   :  { %327 = vst [vmem:[#allocation7 + $0x60] sm:$0xff] %v231_v61  ;;  %v45_v49 = vadd.s32 24, %v540_v1  ;;  %v244_v50 = vadd.f32 %v552_v10, %v122_v34  ;;  %v126_v52 = vmul.f32 %v570_v21, %v61_v20  ;;  %v245_v53 = vadd.f32 %v556_v12, %v123_v41 }
  0x22   :  { %328 = vst [vmem:[#allocation7 + $0x68] sm:$0xff] %v232_v0  ;;  %v127_v54 = vmul.f32 %v577_v26, %v61_v20  ;;  %v246_v55 = vadd.f32 %v560_v14, %v124_v6  ;;  %v128_v56 = vmul.f32 %v586_v35, %v61_v20  ;;  %v247_v57 = vadd.f32 %v566_v18, %v125_v46 }
  0x23   :  { %329 = vst [vmem:[#allocation7 + $0x70] sm:$0xff] %v233_v3  ;;  %v129_v58 = vmul.f32 %v591_v38, %v61_v20  ;;  %v62_v59 = vcvt.s32.f32 %v45_v49  ;;  %v248_v60 = vadd.f32 %v572_v22, %v126_v52  ;;  %v130_v61 = vmul.f32 %v595_v40, %v61_v20 }
  0x24   :  { %330 = vst [vmem:[#allocation7 + $0x78] sm:$0xff] %v234_v5  ;;  %v249_v62 = vadd.f32 %v582_v32, %v127_v54  ;;  %v131_v63 = vmul.f32 %v601_v44, %v61_v20  ;;  %v250_v0 = vadd.f32 %v588_v36, %v128_v56  ;;  %v132_v2 = vmul.f32 %v607_v48, %v61_v20 }
  0x25   :  { %331 = vst [vmem:[#allocation7 + $0x80] sm:$0xff] %v235_v16  ;;  %v46_v3 = vadd.s32 32, %v540_v1  ;;  %v251_v4 = vadd.f32 %v593_v39, %v129_v58  ;;  %v133_v5 = vmul.f32 %v546_v7, %v62_v59  ;;  %v252_v15 = vadd.f32 %v599_v43, %v130_v61 }
  0x26   :  { %332 = vst [vmem:[#allocation7 + $0x88] sm:$0xff] %v236_v23  ;;  %v134_v16 = vmul.f32 %v550_v9, %v62_v59  ;;  %v135_v19 = vmul.f32 %v554_v11, %v62_v59  ;;  %v253_v23 = vadd.f32 %v605_v47, %v131_v63  ;;  %v254_v20 = vadd.f32 %v611_v51, %v132_v2 }
  0x27   :  { %333 = vst [vmem:[#allocation7 + $0x90] sm:$0xff] %v237_v25  ;;  %v136_v24 = vmul.f32 %v558_v13, %v62_v59  ;;  %v685_v25 = vcvt.s32.f32 %v46_v3  ;;  %v255_v27 = vadd.f32 %v548_v8, %v133_v5  ;;  %v138_v29 = vmul.f32 %v570_v21, %v62_v59 }
  0x28   :  { %334 = vst [vmem:[#allocation7 + $0x98] sm:$0xff] %v238_v28  ;;  %v137_v28 = vmul.f32 %v564_v17, %v62_v59  ;;  %v257_v31 = vadd.f32 %v556_v12, %v135_v19  ;;  %v140_v34 = vmul.f32 %v586_v35, %v62_v59  ;;  %v142_v41 = vmul.f32 %v595_v40, %v62_v59 }
  0x29   :  { %335 = vst [vmem:[#allocation7 + $0xa0] sm:$0xff] %v239_v30  ;;  %v256_v30 = vadd.f32 %v552_v10, %v134_v16  ;;  %v144_v6 = vmul.f32 %v607_v48, %v62_v59  ;;  %v145_v46 = vmul.f32 %v546_v7, %v685_v25  ;;  %v146_v49 = vmul.f32 %v550_v9, %v685_v25 }
  0x2a   :  { %336 = vst [vmem:[#allocation7 + $0xa8] sm:$0xff] %v240_v33  ;;  %v139_v33 = vmul.f32 %v577_v26, %v62_v59  ;;  %v259_v52 = vadd.f32 %v566_v18, %v137_v28  ;;  %v48_v54 = vadd.s32 48, %v540_v1  ;;  %v148_v58 = vmul.f32 %v558_v13, %v685_v25 }
  0x2b   :  { %337 = vst [vmem:[#allocation7 + $0xb0] sm:$0xff] %v241_v37  ;;  %v141_v37 = vmul.f32 %v591_v38, %v62_v59  ;;  %v267_v63 = vadd.f32 %v548_v8, %v145_v46  ;;  %v149_v3 = vmul.f32 %v564_v17, %v685_v25  ;;  %v151_v5 = vmul.f32 %v577_v26, %v685_v25 }
  0x2c   :  { %338 = vst [vmem:[#allocation7 + $0xb8] sm:$0xff] %v242_v42  ;;  %v143_v42 = vmul.f32 %v601_v44, %v62_v59  ;;  %v261_v56 = vadd.f32 %v582_v32, %v139_v33  ;;  %v65_v16 = vcvt.s32.f32 %v48_v54  ;;  %v153_v19 = vmul.f32 %v591_v38, %v685_v25 }
  0x2d   :  { %339 = vst [vmem:[#allocation7 + $0xc0] sm:$0xff] %v243_v45  ;;  %v258_v45 = vadd.f32 %v560_v14, %v136_v24  ;;  %v263_v59 = vadd.f32 %v593_v39, %v141_v37 }
  0x2e   :  { %340 = vst [vmem:[#allocation7 + $0xc8] sm:$0xff] %v244_v50  ;;  %v147_v50 = vmul.f32 %v554_v11, %v685_v25  ;;  %v265_v61 = vadd.f32 %v605_v47, %v143_v42  ;;  %v170_v28 = vmul.f32 %v550_v9, %v65_v16  ;;  %v174_v33 = vmul.f32 %v570_v21, %v65_v16 }
  0x2f   :  { %341 = vst [vmem:[#allocation7 + $0xd0] sm:$0xff] %v245_v53  ;;  %v47_v53 = vadd.s32 40, %v540_v1  ;;  %v176_v37 = vmul.f32 %v586_v35, %v65_v16  ;;  %v178_v54 = vmul.f32 %v595_v40, %v65_v16 }
  0x30   :  { %342 = vst [vmem:[#allocation7 + $0xd8] sm:$0xff] %v246_v55  ;;  %v260_v55 = vadd.f32 %v572_v22, %v138_v29  ;;  %v269_v2 = vadd.f32 %v556_v12, %v147_v50  ;;  %v171_v29 = vmul.f32 %v554_v11, %v65_v16  ;;  %v748_v42 = vadd.f32 %v552_v10, %v170_v28 }
  0x31   :  { %343 = vst [vmem:[#allocation7 + $0xe0] sm:$0xff] %v247_v57  ;;  %v262_v57 = vadd.f32 %v588_v36, %v140_v34  ;;  %v734_v24 = vcvt.s32.f32 %v47_v53  ;;  %v175_v34 = vmul.f32 %v577_v26, %v65_v16  ;;  %v177_v53 = vmul.f32 %v591_v38, %v65_v16 }
  0x32   :  { %344 = vst [vmem:[#allocation7 + $0xe8] sm:$0xff] %v248_v60  ;;  %v264_v60 = vadd.f32 %v599_v43, %v142_v41  ;;  %v781_v28 = vadd.f32 %v599_v43, %v178_v54 }
  0x33   :  { %345 = vst [vmem:[#allocation7 + $0xf0] sm:$0xff] %v249_v62  ;;  %v266_v62 = vadd.f32 %v611_v51, %v144_v6  ;;  %v751_v6 = vadd.f32 %v556_v12, %v171_v29  ;;  %v763_v50 = vadd.f32 %v582_v32, %v175_v34 }
  0x34   :  { %346 = vst [vmem:[#allocation7 + $0xf8] sm:$0xff] %v250_v0  ;;  %v268_v0 = vadd.f32 %v552_v10, %v146_v49  ;;  %v760_v49 = vadd.f32 %v572_v22, %v174_v33 }
  0x35   :  { %347 = vst [vmem:[#allocation7 + $0x100] sm:$0xff] %v251_v4  ;;  %v150_v4 = vmul.f32 %v570_v21, %v685_v25 }
  0x36   :  { %348 = vst [vmem:[#allocation7 + $0x108] sm:$0xff] %v252_v15  ;;  %v152_v15 = vmul.f32 %v586_v35, %v685_v25 }
  0x37   :  { %349 = vst [vmem:[#allocation7 + $0x110] sm:$0xff] %v253_v23  ;;  %v154_v23 = vmul.f32 %v595_v40, %v685_v25 }
  0x38   :  { %350 = vst [vmem:[#allocation7 + $0x118] sm:$0xff] %v254_v20  ;;  %v155_v20 = vmul.f32 %v601_v44, %v685_v25 }
  0x39   :  { %351 = vst [vmem:[#allocation7 + $0x120] sm:$0xff] %v255_v27  ;;  %v169_v27 = vmul.f32 %v546_v7, %v65_v16 }
  0x3a   :  { %352 = vst [vmem:[#allocation7 + $0x128] sm:$0xff] %v256_v30  ;;  %v172_v30 = vmul.f32 %v558_v13, %v65_v16 }
  0x3b   :  { %353 = vst [vmem:[#allocation7 + $0x130] sm:$0xff] %v257_v31  ;;  %v173_v31 = vmul.f32 %v564_v17, %v65_v16  ;;  %v745_v41 = vadd.f32 %v548_v8, %v169_v27  ;;  %v49_v27 = vadd.s32 56, %v540_v1  ;;  %v274_v1 = vadd.f32 %v588_v36, %v152_v15 }
  0x3c   :  { %354 = vst [vmem:[#allocation7 + $0x138] sm:$0xff] %v258_v45  ;;  %v754_v45 = vadd.f32 %v560_v14, %v172_v30  ;;  %v277_v30 = vadd.f32 %v605_v47, %v155_v20 }
  0x3d   :  { %355 = vst [vmem:[#allocation7 + $0x140] sm:$0xff] %v259_v52  ;;  %v757_v46 = vadd.f32 %v566_v18, %v173_v31  ;;  %v766_v52 = vadd.f32 %v588_v36, %v176_v37  ;;  %v157_v31 = vmul.f32 %v546_v7, %v734_v24 }
  0x3e   :  { %356 = vst [vmem:[#allocation7 + $0x148] sm:$0xff] %v260_v55  ;;  %v179_v55 = vmul.f32 %v601_v44, %v65_v16 }
  0x3f   :  { %357 = vst [vmem:[#allocation7 + $0x150] sm:$0xff] %v261_v56  ;;  %v180_v56 = vmul.f32 %v607_v48, %v65_v16  ;;  %v276_v16 = vadd.f32 %v599_v43, %v154_v23 }
  0x40   :  { %358 = vst [vmem:[#allocation7 + $0x158] sm:$0xff] %v262_v57  ;;  %v270_v57 = vadd.f32 %v560_v14, %v148_v58  ;;  %v784_v29 = vadd.f32 %v605_v47, %v179_v55  ;;  %v272_v58 = vadd.f32 %v572_v22, %v150_v4 }
  0x41   :  { %359 = vst [vmem:[#allocation7 + $0x160] sm:$0xff] %v263_v59  ;;  %v271_v59 = vadd.f32 %v566_v18, %v149_v3  ;;  %v275_v3 = vadd.f32 %v593_v39, %v153_v19  ;;  %v159_v19 = vmul.f32 %v554_v11, %v734_v24 }
  0x42   :  { %360 = vst [vmem:[#allocation7 + $0x168] sm:$0xff] %v264_v60  ;;  %v156_v60 = vmul.f32 %v607_v48, %v685_v25  ;;  %v273_v25 = vadd.f32 %v582_v32, %v151_v5 }
  0x43   :  { %361 = vst [vmem:[#allocation7 + $0x170] sm:$0xff] %v265_v61  ;;  %v778_v61 = vadd.f32 %v593_v39, %v177_v53 }
  0x44   :  { %362 = vst [vmem:[#allocation7 + $0x178] sm:$0xff] %v266_v62  ;;  %v787_v62 = vadd.f32 %v611_v51, %v180_v56  ;;  %v278_v55 = vadd.f32 %v611_v51, %v156_v60  ;;  %v160_v56 = vmul.f32 %v558_v13, %v734_v24 }
  0x45   :  { %363 = vst [vmem:[#allocation7 + $0x180] sm:$0xff] %v267_v63  ;;  %v66_v63 = vcvt.s32.f32 %v49_v27  ;;  %v279_v27 = vadd.f32 %v548_v8, %v157_v31 }
  0x46   :  { %364 = vst [vmem:[#allocation7 + $0x188] sm:$0xff] %v268_v0 }
  0x47   :  { %365 = vst [vmem:[#allocation7 + $0x190] sm:$0xff] %v269_v2  ;;  %v181_v0 = vmul.f32 %v546_v7, %v66_v63  ;;  %v182_v4 = vmul.f32 %v550_v9, %v66_v63  ;;  %v183_v5 = vmul.f32 %v554_v11, %v66_v63  ;;  %v184_v15 = vmul.f32 %v558_v13, %v66_v63 }
  0x48   :  { %366 = vst [vmem:[#allocation7 + $0x198] sm:$0xff] %v270_v57  ;;  %v158_v2 = vmul.f32 %v550_v9, %v734_v24  ;;  %v185_v23 = vmul.f32 %v564_v17, %v66_v63  ;;  %v186_v20 = vmul.f32 %v570_v21, %v66_v63  ;;  %v187_v53 = vmul.f32 %v577_v26, %v66_v63 }
  0x49   :  { %367 = vst [vmem:[#allocation7 + $0x1a0] sm:$0xff] %v271_v59  ;;  %v808_v7 = vadd.f32 %v548_v8, %v181_v0  ;;  %v811_v33 = vadd.f32 %v552_v10, %v182_v4  ;;  %v814_v34 = vadd.f32 %v556_v12, %v183_v5  ;;  %v817_v37 = vadd.f32 %v560_v14, %v184_v15 }
  0x4a   :  { %368 = vst [vmem:[#allocation7 + $0x1a8] sm:$0xff] %v272_v58  ;;  %v820_v9 = vadd.f32 %v566_v18, %v185_v23  ;;  %v823_v11 = vadd.f32 %v572_v22, %v186_v20  ;;  %v188_v54 = vmul.f32 %v586_v35, %v66_v63  ;;  %v161_v57 = vmul.f32 %v564_v17, %v734_v24 }
  0x4b   :  { %369 = vst [vmem:[#allocation7 + $0x1b0] sm:$0xff] %v273_v25  ;;  %v189_v59 = vmul.f32 %v591_v38, %v66_v63  ;;  %v309_v58 = vadd.f32 %v582_v32, %v187_v53  ;;  %v190_v0 = vmul.f32 %v595_v40, %v66_v63  ;;  %v280_v60 = vadd.f32 %v552_v10, %v158_v2 }
  0x4c   :  { %370 = vst [vmem:[#allocation7 + $0x1b8] sm:$0xff] %v274_v1  ;;  %v310_v25 = vadd.f32 %v588_v36, %v188_v54  ;;  %v162_v13 = vmul.f32 %v570_v21, %v734_v24  ;;  %v191_v17 = vmul.f32 %v601_v44, %v66_v63  ;;  %v163_v8 = vmul.f32 %v577_v26, %v734_v24 }
  0x4d   :  { %371 = vst [vmem:[#allocation7 + $0x1c0] sm:$0xff] %v275_v3  ;;  %v311_v1 = vadd.f32 %v593_v39, %v189_v59  ;;  %v281_v3 = vadd.f32 %v556_v12, %v159_v19  ;;  %v312_v31 = vadd.f32 %v599_v43, %v190_v0  ;;  %v192_v4 = vmul.f32 %v607_v48, %v66_v63 }
  0x4e   :  { %372 = vst [vmem:[#allocation7 + $0x1c8] sm:$0xff] %v276_v16  ;;  %v282_v10 = vadd.f32 %v560_v14, %v160_v56  ;;  %v164_v21 = vmul.f32 %v586_v35, %v734_v24  ;;  %v313_v16 = vadd.f32 %v605_v47, %v191_v17  ;;  %v165_v12 = vmul.f32 %v591_v38, %v734_v24 }
  0x4f   :  { %373 = vst [vmem:[#allocation7 + $0x1d0] sm:$0xff] %v277_v30  ;;  %v283_v30 = vadd.f32 %v566_v18, %v161_v57  ;;  %v314_v26 = vadd.f32 %v611_v51, %v192_v4  ;;  %v284_v5 = vadd.f32 %v572_v22, %v162_v13  ;;  %v166_v63 = vmul.f32 %v595_v40, %v734_v24 }
  0x50   :  { %374 = vst [vmem:[#allocation7 + $0x1d8] sm:$0xff] %v278_v55  ;;  %v285_v14 = vadd.f32 %v582_v32, %v163_v8  ;;  %v167_v35 = vmul.f32 %v601_v44, %v734_v24  ;;  %v286_v18 = vadd.f32 %v588_v36, %v164_v21  ;;  %v168_v38 = vmul.f32 %v607_v48, %v734_v24 }
  0x51   :  { %375 = vst [vmem:[#allocation7 + $0x1e0] sm:$0xff] %v279_v27  ;;  %v287_v15 = vadd.f32 %v593_v39, %v165_v12  ;;  %v288_v22 = vadd.f32 %v599_v43, %v166_v63 }
  0x52   :  { %376 = vst [vmem:[#allocation7 + $0x1e8] sm:$0xff] %v280_v60  ;;  %v289_v40 = vadd.f32 %v605_v47, %v167_v35  ;;  %v290_v32 = vadd.f32 %v611_v51, %v168_v38 }
  0x53   :  { %377 = vst [vmem:[#allocation7 + $0x1f0] sm:$0xff] %v281_v3 }
  0x54   :  { %378 = vst [vmem:[#allocation7 + $0x1f8] sm:$0xff] %v282_v10 }
  0x55   :  { %379 = vst [vmem:[#allocation7 + $0x200] sm:$0xff] %v283_v30 }
  0x56   :  { %380 = vst [vmem:[#allocation7 + $0x208] sm:$0xff] %v284_v5 }
  0x57   :  { %381 = vst [vmem:[#allocation7 + $0x210] sm:$0xff] %v285_v14 }
  0x58   :  { %382 = vst [vmem:[#allocation7 + $0x218] sm:$0xff] %v286_v18 }
  0x59   :  { %383 = vst [vmem:[#allocation7 + $0x220] sm:$0xff] %v287_v15 }
  0x5a   :  { %384 = vst [vmem:[#allocation7 + $0x228] sm:$0xff] %v288_v22 }
  0x5b   :  { %385 = vst [vmem:[#allocation7 + $0x230] sm:$0xff] %v289_v40 }
  0x5c   :  { %386 = vst [vmem:[#allocation7 + $0x238] sm:$0xff] %v290_v32 }
  0x5d   :  { %387 = vst [vmem:[#allocation7 + $0x240] sm:$0xff] %v745_v41 }
  0x5e   :  { %388 = vst [vmem:[#allocation7 + $0x248] sm:$0xff] %v748_v42 }
  0x5f   :  { %389 = vst [vmem:[#allocation7 + $0x250] sm:$0xff] %v751_v6 }
  0x60   :  { %390 = vst [vmem:[#allocation7 + $0x258] sm:$0xff] %v754_v45 }
  0x61   :  { %391 = vst [vmem:[#allocation7 + $0x260] sm:$0xff] %v757_v46 }
  0x62   :  { %392 = vst [vmem:[#allocation7 + $0x268] sm:$0xff] %v760_v49 }
  0x63   :  { %393 = vst [vmem:[#allocation7 + $0x270] sm:$0xff] %v763_v50 }
  0x64   :  { %394 = vst [vmem:[#allocation7 + $0x278] sm:$0xff] %v766_v52 }
  0x65   :  { %395 = vst [vmem:[#allocation7 + $0x280] sm:$0xff] %v778_v61 }
  0x66   :  { %396 = vst [vmem:[#allocation7 + $0x288] sm:$0xff] %v781_v28 }
  0x67   :  { %397 = vst [vmem:[#allocation7 + $0x290] sm:$0xff] %v784_v29 }
  0x68   :  { %398 = vst [vmem:[#allocation7 + $0x298] sm:$0xff] %v787_v62 }
  0x69   :  { %399 = vst [vmem:[#allocation7 + $0x2a0] sm:$0xff] %v808_v7 }
  0x6a   :  { %400 = vst [vmem:[#allocation7 + $0x2a8] sm:$0xff] %v811_v33 }
  0x6b   :  { %401 = vst [vmem:[#allocation7 + $0x2b0] sm:$0xff] %v814_v34 }
  0x6c   :  { %402 = vst [vmem:[#allocation7 + $0x2b8] sm:$0xff] %v817_v37 }
  0x6d   :  { %403 = vst [vmem:[#allocation7 + $0x2c0] sm:$0xff] %v820_v9 }
  0x6e   :  { %404 = vst [vmem:[#allocation7 + $0x2c8] sm:$0xff] %v823_v11 }
  0x6f   :  { %405 = vst [vmem:[#allocation7 + $0x2d0] sm:$0xff] %v309_v58 }
  0x70   :  { %406 = vst [vmem:[#allocation7 + $0x2d8] sm:$0xff] %v310_v25 }
  0x71   :  { %407 = vst [vmem:[#allocation7 + $0x2e0] sm:$0xff] %v311_v1 }
  0x72   :  { %408 = vst [vmem:[#allocation7 + $0x2e8] sm:$0xff] %v312_v31 }
  0x73   :  { %409 = vst [vmem:[#allocation7 + $0x2f0] sm:$0xff] %v313_v16 }
  0x74   :  { %410 = vst [vmem:[#allocation7 + $0x2f8] sm:$0xff] %v314_v26 }
  0x75   :  { %423 = dma.vmem_to_hbm [thread:$0]  %s416_s1, 12288, %s418_s21, [#allocation4], %s517_s22, %s517_s22, %s518_s23  }
  0x76   :  { %512 = dma.done.wait [#allocation4], 12288  }
  0x77   :  { %513 = vsyncadd [#allocation4], 4294955008 }
  0x78   :  { %428 = vsyncpa [#allocation3], 1 }
  0x79   :  { %429 = vsyncpa [#allocation6], 1 }
  0x7a   :  { %430 = vsyncpa [#allocation4], 1 }

</bundles_post_ra>
